<compile_context>
chip_gen: v7x
topology: tpu7x:2x2x1
jax: 0.10.0
libtpu: 0.0.40
codegen_flags: <defaults>
</compile_context>

<pallas_src>
import jax
import jax.numpy as jnp
from jax.experimental import pallas as pl
from jax.experimental.pallas import tpu as pltpu

# ------------------------------- dimensions ----------------------------------
C, IMG_H, IMG_W = 4, 16, 16          # encoder input channels / spatial
IN_FLAT = C * IMG_H * IMG_W          # 1024
CTX = 16                             # context-vector dim produced by the encoder
EMB = 16                             # decoder token-embedding dim
HID = 32                             # GRU hidden dim
VOCAB = 64                           # decoder vocabulary size
VOCAB_PAD = 128                      # lane-padded vocab (argmax-masked)
GATES = 3 * HID                      # z | r | n -> 96
GATES_PAD = 128                      # gates padded to one full vreg of lanes
HCOMB = GATES_PAD + VOCAB_PAD        # fused [Wh | Wo] output width -> 256
D_IN = CTX + EMB                     # decoder step input = cat(context, embedding)
MAX_STEPS = 629                      # same loop bound as the PyTorch reference
SOS_ID, EOS_ID = 0, 1

_VMEM = pl.BlockSpec(memory_space=pltpu.MemorySpace.VMEM)


# --------------------------- fused encoder+decoder ----------------------------
def fused_encdec_kernel(
    x_ref,          # (1, IN_FLAT)            f32 flattened encoder input
    w_enc_ref,      # (IN_FLAT, CTX)          f32
    b_enc_ref,      # (1, CTX)                f32
    wx_ctx_ref,     # (CTX, GATES_PAD)        f32 x-path gate weights (ctx rows)
    b_ih_ref,       # (1, GATES_PAD)          f32
    emb_gates_ref,  # (VOCAB_PAD, GATES_PAD)  f32 emb_pad @ Wx_emb (precomputed)
    w_hcomb_ref,    # (HID, HCOMB)            f32 [Wh | Wo_pad]
    b_comb_ref,     # (1, HCOMB)              f32 [b_hh | bo_pad(-1e30 on pad lanes)]
    onehot_ref,     # OUT (MAX_STEPS, 1, VOCAB_PAD) f32 greedy one-hot per step
    eg_scr,         # VMEM (VOCAB_PAD, GATES_PAD)   f32 scratch
):
    # ---- encoder: ctx = tanh(x @ W_enc + b_enc), shape (1, CTX) --------------
    # TODO(synk): the reference injects an arbitrary `encoder`; modeled here as
    # flatten(NCHW) -> Linear -> tanh producing the squeezed context vector.
    ctx = jnp.tanh(
        jnp.dot(x_ref[...], w_enc_ref[...], preferred_element_type=jnp.float32)
        + b_enc_ref[...]
    )

    # Fold the step-invariant ctx x-path + b_ih into the embedding-gate table:
    # row v of eg_scr == complete x-path gate pre-activation when prev token is v.
    gx_ctx = (
        jnp.dot(ctx, wx_ctx_ref[...], preferred_element_type=jnp.float32)
        + b_ih_ref[...]
    )                                                             # (1, GATES_PAD)
    eg_scr[...] = emb_gates_ref[...] + gx_ctx                     # broadcast over 128 rows

    lane_f = jax.lax.broadcasted_iota(
        jnp.int32, (1, VOCAB_PAD), 1).astype(jnp.float32)

    # ---- initial carries: h = 0, x-path of <sos>, h-path = b_hh --------------
    g_x0 = eg_scr[SOS_ID:SOS_ID + 1, :]                           # (1, GATES_PAD)
    g_h0 = b_comb_ref[:, :GATES_PAD]                              # (1, GATES_PAD)
    h0 = jnp.zeros((1, HID), jnp.float32)

    def step(t, carry):
        g_x, g_h, h_prev = carry

        # GRU cell (torch.nn.GRUCell semantics, z|r|n layout).
        zr = jax.nn.sigmoid(g_x[:, :2 * HID] + g_h[:, :2 * HID])  # fused z|r
        z = zr[:, :HID]
        r = zr[:, HID:]
        n = jnp.tanh(g_x[:, 2 * HID:GATES] + r * g_h[:, 2 * HID:GATES])
        h = (1.0 - z) * n + z * h_prev                            # (1, HID)

        # fused [Wh | Wo]: next step's h-path gates + this step's vocab logits.
        h_comb = (
            jnp.dot(h, w_hcomb_ref[...], preferred_element_type=jnp.float32)
            + b_comb_ref[...]
        )                                                         # (1, HCOMB)
        g_h_next = h_comb[:, :GATES_PAD]
        logits = h_comb[:, GATES_PAD:]                            # (1, VOCAB_PAD)

        # greedy token as a first-max one-hot (padded lanes carry -1e30 bias,
        # so they can never win; min-of-where reproduces torch.argmax tie-break).
        mx = jnp.max(logits, axis=1, keepdims=True)               # (1, 1)
        idx = jnp.min(
            jnp.where(logits == mx, lane_f, jnp.float32(VOCAB_PAD)),
            axis=1, keepdims=True,
        )                                                         # (1, 1)
        onehot = (lane_f == idx).astype(jnp.float32)              # (1, VOCAB_PAD)
        onehot_ref[t] = onehot                                    # record this step

        # next-step x-path gates via one-hot matmul (no gather, no scalar sync).
        g_x_next = jnp.dot(onehot, eg_scr[...],
                           preferred_element_type=jnp.float32)    # (1, GATES_PAD)
        return (g_x_next, g_h_next, h)

    _ = jax.lax.fori_loop(0, MAX_STEPS, step, (g_x0, g_h0, h0))


# ------------------------------ parameters ------------------------------------
def init_params(key):
    ks = jax.random.split(key, 9)
    s = 0.1
    return {
        "w_enc": s * jax.random.normal(ks[0], (IN_FLAT, CTX), jnp.float32),
        "b_enc": s * jax.random.normal(ks[1], (1, CTX), jnp.float32),
        "emb":   s * jax.random.normal(ks[2], (VOCAB, EMB), jnp.float32),
        "wx":    s * jax.random.normal(ks[3], (3, D_IN, HID), jnp.float32),
        "wh":    s * jax.random.normal(ks[4], (3, HID, HID), jnp.float32),
        "b_ih":  s * jax.random.normal(ks[5], (3, 1, HID), jnp.float32),
        "b_hh":  s * jax.random.normal(ks[6], (3, 1, HID), jnp.float32),
        "wo":    s * jax.random.normal(ks[7], (HID, VOCAB), jnp.float32),
        "bo":    s * jax.random.normal(ks[8], (1, VOCAB), jnp.float32),
    }


def prepare_params(p):
    """Fuse/pad weights once on the host: gate concat, emb@Wx_emb fold, Wh|Wo fuse."""
    wx = jnp.concatenate([p["wx"][0], p["wx"][1], p["wx"][2]], axis=1)        # (D_IN, 96)
    wh = jnp.concatenate([p["wh"][0], p["wh"][1], p["wh"][2]], axis=1)        # (HID, 96)
    b_ih = jnp.concatenate([p["b_ih"][0], p["b_ih"][1], p["b_ih"][2]], axis=1)
    b_hh = jnp.concatenate([p["b_hh"][0], p["b_hh"][1], p["b_hh"][2]], axis=1)

    def pad_lanes(a, width, fill=0.0):
        out = jnp.full(a.shape[:-1] + (width,), fill, a.dtype)
        return out.at[..., :a.shape[-1]].set(a)

    wx_ctx = pad_lanes(wx[:CTX], GATES_PAD)                # (CTX, 128)
    wx_emb = pad_lanes(wx[CTX:], GATES_PAD)                # (EMB, 128)
    b_ih_p = pad_lanes(b_ih, GATES_PAD)                    # (1, 128)
    wh_p = pad_lanes(wh, GATES_PAD)                        # (HID, 128)
    b_hh_p = pad_lanes(b_hh, GATES_PAD)                    # (1, 128)

    emb_pad = jnp.zeros((VOCAB_PAD, EMB), jnp.float32).at[:VOCAB].set(p["emb"])
    emb_gates = emb_pad @ wx_emb                           # (128, 128) offline fold

    wo_pad = jnp.zeros((HID, VOCAB_PAD), jnp.float32).at[:, :VOCAB].set(p["wo"])
    bo_pad = jnp.full((1, VOCAB_PAD), -1e30, jnp.float32).at[:, :VOCAB].set(p["bo"])

    w_hcomb = jnp.concatenate([wh_p, wo_pad], axis=1)      # (HID, 256)
    b_comb = jnp.concatenate([b_hh_p, bo_pad], axis=1)     # (1, 256)

    return {
        "w_enc": p["w_enc"], "b_enc": p["b_enc"], "wx_ctx": wx_ctx,
        "b_ih": b_ih_p, "emb_gates": emb_gates,
        "w_hcomb": w_hcomb, "b_comb": b_comb,
    }


# ------------------------------ fused forward ----------------------------------
@jax.jit
def fused_generate(x_nchw, fp):
    """Encoder + all 629 greedy GRU steps in one pallas_call; tiny XLA postlude."""
    x_flat = x_nchw.reshape(1, -1).astype(jnp.float32)     # NCHW flattened row-major
    onehots = pl.pallas_call(
        fused_encdec_kernel,
        out_shape=jax.ShapeDtypeStruct((MAX_STEPS, 1, VOCAB_PAD), jnp.float32),
        in_specs=[_VMEM] * 8,
        out_specs=_VMEM,
        scratch_shapes=[
            pltpu.VMEM((VOCAB_PAD, GATES_PAD), jnp.float32),   # emb-gate table + ctx
        ],
    )(x_flat, fp["w_enc"], fp["b_enc"], fp["wx_ctx"], fp["b_ih"],
      fp["emb_gates"], fp["w_hcomb"], fp["b_comb"])

    tokens = jnp.argmax(onehots.reshape(MAX_STEPS, VOCAB_PAD), axis=1).astype(jnp.int32)
    is_eos = tokens == EOS_ID
    count = jnp.where(jnp.any(is_eos), jnp.argmax(is_eos), MAX_STEPS).astype(jnp.int32)
    return tokens, count


def encoder_decoder_forward(x, fused_params, vocab):
    tokens, count = fused_generate(x, fused_params)
    jax.block_until_ready(tokens)                          # single device sync
    n = int(jax.device_get(count))                         # tokens before first <eos>
    toks = jax.device_get(tokens)
    # TODO(synk): string-list construction (decoder.vocab[token]) has no device
    # equivalent; it stays host-side, done once after the fused kernel.
    return [vocab[int(t)] for t in toks[:n]]


if __name__ == "__main__":
    key = jax.random.PRNGKey(0)
    k_x, k_p = jax.random.split(key)
    vocab = ["<sos>", "<eos>"] + [f"tok{i}" for i in range(VOCAB - 2)]
    params = init_params(k_p)
    fused_params = prepare_params(params)
    # batch = 1: the reference forward squeezes the encoder output and feeds
    # single-row tensors through the decoder loop.
    x = jax.random.normal(k_x, (1, C, IMG_H, IMG_W), jnp.float32)
    outs = encoder_decoder_forward(x, fused_params, vocab)
    assert isinstance(outs, list) and len(outs) <= MAX_STEPS
    assert all(isinstance(w, str) for w in outs)
    print("KERNEL_OK")
</pallas_src>

<mosaic_0001>
module attributes {stable_mosaic.version = 11 : i64} {
  func.func @fused_encdec_kernel(%arg0: memref<1x1024xf32, #tpu.memory_space<vmem>>, %arg1: memref<1024x16xf32, #tpu.memory_space<vmem>>, %arg2: memref<1x16xf32, #tpu.memory_space<vmem>>, %arg3: memref<16x128xf32, #tpu.memory_space<vmem>>, %arg4: memref<1x128xf32, #tpu.memory_space<vmem>>, %arg5: memref<128x128xf32, #tpu.memory_space<vmem>>, %arg6: memref<32x256xf32, #tpu.memory_space<vmem>>, %arg7: memref<1x256xf32, #tpu.memory_space<vmem>>, %arg8: memref<629x1x128xf32, #tpu.memory_space<vmem>>, %arg9: memref<128x128xf32, #tpu.memory_space<vmem>>) attributes {dimension_semantics = [], scalar_prefetch = 0 : i64, scratch_operands = 1 : i64, tpu.core_type = #tpu.core_type<tc>} {
    %c0 = arith.constant 0 : index
    %c0_0 = arith.constant 0 : index
    %0 = vector.load %arg0[%c0, %c0_0] : memref<1x1024xf32, #tpu.memory_space<vmem>>, vector<1x1024xf32>
    %c0_1 = arith.constant 0 : index
    %c0_2 = arith.constant 0 : index
    %1 = vector.load %arg1[%c0_1, %c0_2] : memref<1024x16xf32, #tpu.memory_space<vmem>>, vector<1024x16xf32>
    %cst = arith.constant dense<0.000000e+00> : vector<1x16xf32>
    %2 = tpu.matmul %0, %1, %cst {dimension_numbers = #tpu.dot_dimension_numbers<[1], [0], [0], [1], [0, 0, 1, 1], [], []>} : vector<1x1024xf32>, vector<1024x16xf32>, vector<1x16xf32> -> vector<1x16xf32>
    %c0_3 = arith.constant 0 : index
    %c0_4 = arith.constant 0 : index
    %3 = vector.load %arg2[%c0_3, %c0_4] : memref<1x16xf32, #tpu.memory_space<vmem>>, vector<1x16xf32>
    %4 = arith.addf %2, %3 : vector<1x16xf32>
    %5 = math.tanh %4 : vector<1x16xf32>
    %c0_5 = arith.constant 0 : index
    %c0_6 = arith.constant 0 : index
    %6 = vector.load %arg3[%c0_5, %c0_6] : memref<16x128xf32, #tpu.memory_space<vmem>>, vector<16x128xf32>
    %cst_7 = arith.constant dense<0.000000e+00> : vector<1x128xf32>
    %7 = tpu.matmul %5, %6, %cst_7 {dimension_numbers = #tpu.dot_dimension_numbers<[1], [0], [0], [1], [0, 0, 1, 1], [], []>} : vector<1x16xf32>, vector<16x128xf32>, vector<1x128xf32> -> vector<1x128xf32>
    %c0_8 = arith.constant 0 : index
    %c0_9 = arith.constant 0 : index
    %8 = vector.load %arg4[%c0_8, %c0_9] : memref<1x128xf32, #tpu.memory_space<vmem>>, vector<1x128xf32>
    %9 = arith.addf %7, %8 : vector<1x128xf32>
    %c0_10 = arith.constant 0 : index
    %c0_11 = arith.constant 0 : index
    %10 = vector.load %arg5[%c0_10, %c0_11] : memref<128x128xf32, #tpu.memory_space<vmem>>, vector<128x128xf32>
    %11 = vector.broadcast %9 : vector<1x128xf32> to vector<128x128xf32>
    %12 = arith.addf %10, %11 : vector<128x128xf32>
    %c0_12 = arith.constant 0 : index
    %c0_13 = arith.constant 0 : index
    %13 = vector.load %arg9[%c0_12, %c0_13] : memref<128x128xf32, #tpu.memory_space<vmem>>, vector<128x128xf32>
    tpu.vector_store %arg9[%c0_12, %c0_13], %12 {strides = array<i32>} : memref<128x128xf32, #tpu.memory_space<vmem>>, vector<128x128xf32>,
    %14 = tpu.iota {dimensions = array<i32: 1>} : vector<1x128xi32>
    %15 = arith.sitofp %14 : vector<1x128xi32> to vector<1x128xf32>
    %c0_14 = arith.constant 0 : index
    %c0_15 = arith.constant 0 : index
    %16 = vector.load %arg9[%c0_14, %c0_15] : memref<128x128xf32, #tpu.memory_space<vmem>>, vector<1x128xf32>
    %c0_16 = arith.constant 0 : index
    %c0_17 = arith.constant 0 : index
    %17 = vector.load %arg7[%c0_16, %c0_17] : memref<1x256xf32, #tpu.memory_space<vmem>>, vector<1x128xf32>
    %cst_18 = arith.constant 0.000000e+00 : f32
    %18 = vector.broadcast %cst_18 : f32 to vector<1x32xf32>
    %c0_i32 = arith.constant 0 : i32
    %c629_i32 = arith.constant 629 : i32
    %19 = arith.addi %c0_i32, %c629_i32 : i32
    %c1_i32 = arith.constant 1 : i32
    %20:3 = scf.for %arg10 = %c0_i32 to %19 step %c1_i32 iter_args(%arg11 = %16, %arg12 = %17, %arg13 = %18) -> (vector<1x128xf32>, vector<1x128xf32>, vector<1x32xf32>)  : i32 {
      %21 = vector.extract_strided_slice %arg11 {offsets = [0, 0], sizes = [1, 64], strides = [1, 1]} : vector<1x128xf32> to vector<1x64xf32>
      %22 = vector.extract_strided_slice %arg12 {offsets = [0, 0], sizes = [1, 64], strides = [1, 1]} : vector<1x128xf32> to vector<1x64xf32>
      %23 = arith.addf %21, %22 : vector<1x64xf32>
      %24 = arith.negf %23 : vector<1x64xf32>
      %25 = math.exp %24 : vector<1x64xf32>
      %cst_20 = arith.constant 1.000000e+00 : f32
      %26 = vector.broadcast %cst_20 : f32 to vector<1x64xf32>
      %27 = arith.addf %26, %25 : vector<1x64xf32>
      %28 = arith.divf %26, %27 : vector<1x64xf32>
      %29 = vector.extract_strided_slice %28 {offsets = [0, 0], sizes = [1, 32], strides = [1, 1]} : vector<1x64xf32> to vector<1x32xf32>
      %30 = vector.extract_strided_slice %28 {offsets = [0, 32], sizes = [1, 32], strides = [1, 1]} : vector<1x64xf32> to vector<1x32xf32>
      %31 = vector.extract_strided_slice %arg11 {offsets = [0, 64], sizes = [1, 32], strides = [1, 1]} : vector<1x128xf32> to vector<1x32xf32>
      %32 = vector.extract_strided_slice %arg12 {offsets = [0, 64], sizes = [1, 32], strides = [1, 1]} : vector<1x128xf32> to vector<1x32xf32>
      %33 = arith.mulf %30, %32 : vector<1x32xf32>
      %34 = arith.addf %31, %33 : vector<1x32xf32>
      %35 = math.tanh %34 : vector<1x32xf32>
      %cst_21 = arith.constant 1.000000e+00 : f32
      %36 = vector.broadcast %cst_21 : f32 to vector<1x32xf32>
      %37 = arith.subf %36, %29 : vector<1x32xf32>
      %38 = arith.mulf %37, %35 : vector<1x32xf32>
      %39 = arith.mulf %29, %arg13 : vector<1x32xf32>
      %40 = arith.addf %38, %39 : vector<1x32xf32>
      %c0_22 = arith.constant 0 : index
      %c0_23 = arith.constant 0 : index
      %41 = vector.load %arg6[%c0_22, %c0_23] : memref<32x256xf32, #tpu.memory_space<vmem>>, vector<32x256xf32>
      %cst_24 = arith.constant dense<0.000000e+00> : vector<1x256xf32>
      %42 = tpu.matmul %40, %41, %cst_24 {dimension_numbers = #tpu.dot_dimension_numbers<[1], [0], [0], [1], [0, 0, 1, 1], [], []>} : vector<1x32xf32>, vector<32x256xf32>, vector<1x256xf32> -> vector<1x256xf32>
      %c0_25 = arith.constant 0 : index
      %c0_26 = arith.constant 0 : index
      %43 = vector.load %arg7[%c0_25, %c0_26] : memref<1x256xf32, #tpu.memory_space<vmem>>, vector<1x256xf32>
      %44 = arith.addf %42, %43 : vector<1x256xf32>
      %45 = vector.extract_strided_slice %44 {offsets = [0, 0], sizes = [1, 128], strides = [1, 1]} : vector<1x256xf32> to vector<1x128xf32>
      %46 = vector.extract_strided_slice %44 {offsets = [0, 128], sizes = [1, 128], strides = [1, 1]} : vector<1x256xf32> to vector<1x128xf32>
      %cst_27 = arith.constant dense<0xFF800000> : vector<1xf32>
      %47 = vector.multi_reduction <maximumf>, %46, %cst_27 [1] : vector<1x128xf32> to vector<1xf32>
      %48 = vector.shape_cast %47 : vector<1xf32> to vector<1x1xf32>
      %49 = vector.broadcast %48 : vector<1x1xf32> to vector<1x128xf32>
      %50 = arith.cmpf oeq, %46, %49 : vector<1x128xf32>
      %cst_28 = arith.constant 1.280000e+02 : f32
      %51 = vector.broadcast %cst_28 : f32 to vector<1x128xf32>
      %52 = arith.select %50, %15, %51 : vector<1x128xi1>, vector<1x128xf32>
      %cst_29 = arith.constant dense<0x7F800000> : vector<1xf32>
      %53 = vector.multi_reduction <minimumf>, %52, %cst_29 [1] : vector<1x128xf32> to vector<1xf32>
      %54 = vector.shape_cast %53 : vector<1xf32> to vector<1x1xf32>
      %55 = vector.broadcast %54 : vector<1x1xf32> to vector<1x128xf32>
      %56 = arith.cmpf oeq, %15, %55 : vector<1x128xf32>
      %57 = arith.extui %56 : vector<1x128xi1> to vector<1x128xi32>
      %58 = arith.sitofp %57 : vector<1x128xi32> to vector<1x128xf32>
      %59 = arith.index_cast %arg10 : i32 to index
      %c0_30 = arith.constant 0 : index
      %c0_31 = arith.constant 0 : index
      %60 = vector.load %arg8[%59, %c0_30, %c0_31] : memref<629x1x128xf32, #tpu.memory_space<vmem>>, vector<1x1x128xf32>
      %61 = vector.shape_cast %60 : vector<1x1x128xf32> to vector<1x128xf32>
      %62 = vector.shape_cast %58 : vector<1x128xf32> to vector<1x1x128xf32>
      tpu.vector_store %arg8[%59, %c0_30, %c0_31], %62 {strides = array<i32>} : memref<629x1x128xf32, #tpu.memory_space<vmem>>, vector<1x1x128xf32>,
      %c0_32 = arith.constant 0 : index
      %c0_33 = arith.constant 0 : index
      %63 = vector.load %arg9[%c0_32, %c0_33] : memref<128x128xf32, #tpu.memory_space<vmem>>, vector<128x128xf32>
      %cst_34 = arith.constant dense<0.000000e+00> : vector<1x128xf32>
      %64 = tpu.matmul %58, %63, %cst_34 {dimension_numbers = #tpu.dot_dimension_numbers<[1], [0], [0], [1], [0, 0, 1, 1], [], []>} : vector<1x128xf32>, vector<128x128xf32>, vector<1x128xf32> -> vector<1x128xf32>
      scf.yield %64, %45, %40 : vector<1x128xf32>, vector<1x128xf32>, vector<1x32xf32>
    }
    %c629_i32_19 = arith.constant 629 : i32
    return
  }
}

</mosaic_0001>

<bundles_post_ra>
// kernel: fused_generate.1
= control target key start
LH: loop header
LB: loop body
LE: loop exit
PB: predicated region body
PF: predicated region fallthrough
CT: control target
= control target key end

     0   :  { %v160_v0 = vlaneseq  ;;  %vm1317_vm0 = vmmov 0   ;;  %vm484_vm1 = vcmask 130048   ;;  %s1925_s1 = inlined_call_operand.vmem [shape: f32[1024,16], index: 1, kind: input, shape index: {}]   ;;  %s1926_s6 = inlined_call_operand.vmem [shape: f32[32,256], index: 6, kind: input, shape index: {}]   ;;  %s1927_s8 = inlined_call_operand.vmem [shape: f32[629,1,128], index: 8, kind: output, shape index: {}]   ;;  %s1928_s0 = inlined_call_operand.vmem [shape: f32[1,1024], index: 0, kind: input, shape index: {}]   ;;  %s1929_s3 = inlined_call_operand.vmem [shape: f32[16,128], index: 3, kind: input, shape index: {}]   ;;  %s1930_s2 = inlined_call_operand.vmem [shape: f32[1,16], index: 2, kind: input, shape index: {}]   ;;  %s1931_s7 = inlined_call_operand.vmem [shape: f32[1,256], index: 7, kind: input, shape index: {}]   ;;  %s1932_s4 = inlined_call_operand.vmem [shape: f32[1,128], index: 4, kind: input, shape index: {}]   ;;  %s1933_s5 = inlined_call_operand.vmem [shape: f32[128,128], index: 5, kind: input, shape index: {}]  }
   0x1   :  { %v46_v1 = vld [vmem:[%s1925_s1 + $0x80] sm:$0xff]  ;;  %v47_v2 = vld [vmem:[%s1925_s1 + $0x88] sm:$0xff]  ;;  %v48_v13 = vld [vmem:[%s1925_s1 + $0x90] sm:$0xff] }
   0x2   :  { %v30_v3 = vld [vmem:[%s1925_s1] sm:$0xff]  ;;  %v1071_v4 = vpack.c.bf16 %v47_v2, %v46_v1  ;;  %v31_v5 = vld [vmem:[%s1925_s1 + $0x8] sm:$0xff]  ;;  %v1390_v8 = vand.u32 127, %v160_v0  ;;  %v49_v15 = vld [vmem:[%s1925_s1 + $0x98] sm:$0xff]  ;;  %v1502_v63 = vshrl.u32 %v160_v0, 7 }
   0x3   :  { %v78_v6 = vld [vmem:[%s1925_s1 + $0x180] sm:$0xff]  ;;  %v79_v7 = vld [vmem:[%s1925_s1 + $0x188] sm:$0xff]  ;;  %v1073_v9 = vpack.c.bf16 %v31_v5, %v30_v3  ;;  %v32_v16 = vld [vmem:[%s1925_s1 + $0x10] sm:$0xff]  ;;  %v1075_v19 = vpack.c.bf16 %v49_v15, %v48_v13 }
   0x4   :  { %v1103_v10 = vpack.c.bf16 %v79_v7, %v78_v6  ;;  %v62_v11 = vld [vmem:[%s1925_s1 + $0x100] sm:$0xff]  ;;  %v63_v12 = vld [vmem:[%s1925_s1 + $0x108] sm:$0xff]  ;;  %1072 = vmatprep.subr.bf16.mxu0 %v1071_v4  ;;  %v33_v17 = vld [vmem:[%s1925_s1 + $0x18] sm:$0xff]  ;;  %v612_v18 = vcvt.s32.f32 %v1390_v8  ;;  %v166_v13 = vsub.s32 1, %v1502_v63 }
   0x5   :  { %v1105_v14 = vpack.c.bf16 %v63_v12, %v62_v11  ;;  %1074 = vmatpush3.bf16.msra.mxu0 %v1073_v9  ;;  %v1077_v20 = vpack.c.bf16 %v33_v17, %v32_v16  ;;  %v80_v21 = vld [vmem:[%s1925_s1 + $0x190] sm:$0xff]  ;;  %v81_v22 = vld [vmem:[%s1925_s1 + $0x198] sm:$0xff]  ;;  %v50_v26 = vld [vmem:[%s1925_s1 + $0xa0] sm:$0xff] }
   0x6   :  { %1104 = vmatprep.subr.bf16.mxu1 %v1103_v10  ;;  %v64_v23 = vld [vmem:[%s1925_s1 + $0x110] sm:$0xff]  ;;  %v1107_v24 = vpack.c.bf16 %v81_v22, %v80_v21  ;;  %v65_v25 = vld [vmem:[%s1925_s1 + $0x118] sm:$0xff]  ;;  %v51_v27 = vld [vmem:[%s1925_s1 + $0xa8] sm:$0xff]  ;;  %1076 = vmatprep.subr.bf16.mxu0 %v1075_v19 }
   0x7   :  { %1106 = vmatpush3.bf16.msra.mxu1 %v1105_v14  ;;  %v1109_v28 = vpack.c.bf16 %v65_v25, %v64_v23  ;;  %v1079_v29 = vpack.c.bf16 %v51_v27, %v50_v26  ;;  %v34_v30 = vld [vmem:[%s1925_s1 + $0x20] sm:$0xff]  ;;  %v35_v31 = vld [vmem:[%s1925_s1 + $0x28] sm:$0xff]  ;;  %v52_v38 = vld [vmem:[%s1925_s1 + $0xb0] sm:$0xff]  ;;  %v174_v14 = vsub.s32 3, %v1502_v63 }
   0x8   :  { %v82_v32 = vld [vmem:[%s1925_s1 + $0x1a0] sm:$0xff]  ;;  %1108 = vmatprep.subr.bf16.mxu1 %v1107_v24  ;;  %v83_v33 = vld [vmem:[%s1925_s1 + $0x1a8] sm:$0xff]  ;;  %v1081_v36 = vpack.c.bf16 %v35_v31, %v34_v30  ;;  %v53_v39 = vld [vmem:[%s1925_s1 + $0xb8] sm:$0xff] }
   0x9   :  { %v66_v34 = vld [vmem:[%s1925_s1 + $0x120] sm:$0xff]  ;;  %v67_v35 = vld [vmem:[%s1925_s1 + $0x128] sm:$0xff]  ;;  %1078 = vmatpush3.bf16.msra.mxu0 %v1077_v20  ;;  %v1111_v37 = vpack.c.bf16 %v83_v33, %v82_v32  ;;  %v36_v40 = vld [vmem:[%s1925_s1 + $0x30] sm:$0xff]  ;;  %v1083_v42 = vpack.c.bf16 %v53_v39, %v52_v38 }
   0xa   :  { %1080 = vmatprep.subr.bf16.mxu0 %v1079_v29  ;;  %v1113_v41 = vpack.c.bf16 %v67_v35, %v66_v34  ;;  %v37_v43 = vld [vmem:[%s1925_s1 + $0x38] sm:$0xff]  ;;  %v84_v44 = vld [vmem:[%s1925_s1 + $0x1b0] sm:$0xff]  ;;  %v54_v49 = vld [vmem:[%s1925_s1 + $0xc0] sm:$0xff] }
   0xb   :  { %1110 = vmatpush3.bf16.msra.mxu1 %v1109_v28  ;;  %v85_v45 = vld [vmem:[%s1925_s1 + $0x1b8] sm:$0xff]  ;;  %v68_v47 = vld [vmem:[%s1925_s1 + $0x130] sm:$0xff]  ;;  %v55_v50 = vld [vmem:[%s1925_s1 + $0xc8] sm:$0xff]  ;;  %v1085_v51 = vpack.c.bf16 %v37_v43, %v36_v40  ;;  %v1588_v43 = vsub.s32 0, %v1502_v63 }
   0xc   :  { %1112 = vmatprep.subr.bf16.mxu1 %v1111_v37  ;;  %v1115_v46 = vpack.c.bf16 %v85_v45, %v84_v44  ;;  %v69_v48 = vld [vmem:[%s1925_s1 + $0x138] sm:$0xff]  ;;  %v86_v52 = vld [vmem:[%s1925_s1 + $0x1c0] sm:$0xff]  ;;  %v87_v53 = vld [vmem:[%s1925_s1 + $0x1c8] sm:$0xff]  ;;  %v1087_v55 = vpack.c.bf16 %v55_v50, %v54_v49 }
   0xd   :  { %1082 = vmatpush3.bf16.msra.mxu0 %v1081_v36  ;;  %v1117_v54 = vpack.c.bf16 %v69_v48, %v68_v47  ;;  %v38_v56 = vld [vmem:[%s1925_s1 + $0x40] sm:$0xff]  ;;  %v39_v57 = vld [vmem:[%s1925_s1 + $0x48] sm:$0xff]  ;;  %v1119_v59 = vpack.c.bf16 %v87_v53, %v86_v52  ;;  %v56_v61 = vld [vmem:[%s1925_s1 + $0xd0] sm:$0xff]  ;;  %v170_v47 = vsub.s32 2, %v1502_v63 }
   0xe   :  { %1084 = vmatprep.subr.bf16.mxu0 %v1083_v42  ;;  %v70_v58 = vld [vmem:[%s1925_s1 + $0x140] sm:$0xff]  ;;  %v71_v60 = vld [vmem:[%s1925_s1 + $0x148] sm:$0xff]  ;;  %v57_v62 = vld [vmem:[%s1925_s1 + $0xd8] sm:$0xff]  ;;  %v1089_v3 = vpack.c.bf16 %v39_v57, %v38_v56  ;;  %v182_v57 = vsub.s32 5, %v1502_v63 }
   0xf   :  { %1114 = vmatpush3.bf16.msra.mxu1 %v1113_v41  ;;  %v88_v1 = vld [vmem:[%s1925_s1 + $0x1d0] sm:$0xff]  ;;  %v89_v2 = vld [vmem:[%s1925_s1 + $0x1d8] sm:$0xff]  ;;  %v1121_v4 = vpack.c.bf16 %v71_v60, %v70_v58  ;;  %v1091_v5 = vpack.c.bf16 %v57_v62, %v56_v61  ;;  %v58_v11 = vld [vmem:[%s1925_s1 + $0xe0] sm:$0xff]  ;;  %v190_v61 = vsub.s32 7, %v1502_v63 }
  0x10   :  { %1116 = vmatprep.subr.bf16.mxu1 %v1115_v46  ;;  %v40_v6 = vld [vmem:[%s1925_s1 + $0x50] sm:$0xff]  ;;  %v41_v0 = vld [vmem:[%s1925_s1 + $0x58] sm:$0xff]  ;;  %v1123_v9 = vpack.c.bf16 %v89_v2, %v88_v1  ;;  %v59_v12 = vld [vmem:[%s1925_s1 + $0xe8] sm:$0xff] }
  0x11   :  { %1086 = vmatpush3.bf16.msra.mxu0 %v1085_v51  ;;  %v72_v7 = vld [vmem:[%s1925_s1 + $0x150] sm:$0xff]  ;;  %v73_v10 = vld [vmem:[%s1925_s1 + $0x158] sm:$0xff]  ;;  %v90_v15 = vld [vmem:[%s1925_s1 + $0x1e0] sm:$0xff]  ;;  %v1093_v17 = vpack.c.bf16 %v41_v0, %v40_v6  ;;  %v1095_v21 = vpack.c.bf16 %v59_v12, %v58_v11 }
  0x12   :  { %1088 = vmatprep.subr.bf16.mxu0 %v1087_v55  ;;  %v91_v16 = vld [vmem:[%s1925_s1 + $0x1e8] sm:$0xff]  ;;  %v42_v19 = vld [vmem:[%s1925_s1 + $0x60] sm:$0xff]  ;;  %v1125_v20 = vpack.c.bf16 %v73_v10, %v72_v7  ;;  %v60_v27 = vld [vmem:[%s1925_s1 + $0xf0] sm:$0xff] }
  0x13   :  { %1118 = vmatpush3.bf16.msra.mxu1 %v1117_v54  ;;  %v43_v22 = vld [vmem:[%s1925_s1 + $0x68] sm:$0xff]  ;;  %v74_v23 = vld [vmem:[%s1925_s1 + $0x160] sm:$0xff]  ;;  %v1127_v25 = vpack.c.bf16 %v91_v16, %v90_v15  ;;  %v61_v28 = vld [vmem:[%s1925_s1 + $0xf8] sm:$0xff] }
  0x14   :  { %1120 = vmatprep.subr.bf16.mxu1 %v1119_v59  ;;  %v1548_v24 = vld [vmem:[%s1928_s0] sm:$0xff]  ;;  %v75_v26 = vld [vmem:[%s1925_s1 + $0x168] sm:$0xff]  ;;  %v92_v31 = vld [vmem:[%s1925_s1 + $0x1f0] sm:$0xff]  ;;  %v1097_v33 = vpack.c.bf16 %v43_v22, %v42_v19  ;;  %v1099_v35 = vpack.c.bf16 %v61_v28, %v60_v27 }
  0x15   :  { %1090 = vmatpush3.bf16.msra.mxu0 %v1089_v3  ;;  %v167_v29 = vrot.slane %v1548_v24, %v166_v13  ;;  %v175_v30 = vrot.slane %v1548_v24, %v174_v14  ;;  %v93_v32 = vld [vmem:[%s1925_s1 + $0x1f8] sm:$0xff]  ;;  %v1129_v34 = vpack.c.bf16 %v75_v26, %v74_v23  ;;  %v44_v36 = vld [vmem:[%s1925_s1 + $0x70] sm:$0xff]  ;;  %v110_v41 = vld [vmem:[%s1925_s1 + $0x280] sm:$0xff]  ;;  %v163_v58 = vrot.slane %v1548_v24, %v1588_v43 }
  0x16   :  { %1092 = vmatprep.subr.bf16.mxu0 %v1091_v5  ;;  %v45_v37 = vld [vmem:[%s1925_s1 + $0x78] sm:$0xff]  ;;  %v76_v38 = vld [vmem:[%s1925_s1 + $0x170] sm:$0xff]  ;;  %v1131_v39 = vpack.c.bf16 %v93_v32, %v92_v31  ;;  %v111_v42 = vld [vmem:[%s1925_s1 + $0x288] sm:$0xff]  ;;  %v171_v1 = vrot.slane %v1548_v24, %v170_v47  ;;  %v183_v11 = vrot.slane %v1548_v24, %v182_v57  ;;  %v191_v15 = vrot.slane %v1548_v24, %v190_v61 }
  0x17   :  { %1122 = vmatpush3.bf16.msra.mxu1 %v1121_v4  ;;  %264 = vmatprep.mubr.f32.mxu0 %v167_v29  ;;  %v77_v40 = vld [vmem:[%s1925_s1 + $0x178] sm:$0xff]  ;;  %v142_v44 = vld [vmem:[%s1925_s1 + $0x380] sm:$0xff]  ;;  %v143_v45 = vld [vmem:[%s1925_s1 + $0x388] sm:$0xff]  ;;  %v1101_v46 = vpack.c.bf16 %v45_v37, %v44_v36  ;;  %v1135_v49 = vpack.c.bf16 %v111_v42, %v110_v41 }
  0x18   :  { %1124 = vmatprep.subr.bf16.mxu1 %v1123_v9  ;;  %334 = vmatprep.mubr.f32.mxu1 %v175_v30  ;;  %v1133_v48 = vpack.c.bf16 %v77_v40, %v76_v38  ;;  %v94_v50 = vld [vmem:[%s1925_s1 + $0x200] sm:$0xff]  ;;  %v95_v51 = vld [vmem:[%s1925_s1 + $0x208] sm:$0xff]  ;;  %v1167_v53 = vpack.c.bf16 %v143_v45, %v142_v44  ;;  %v112_v55 = vld [vmem:[%s1925_s1 + $0x290] sm:$0xff] }
  0x19   :  { %1094 = vmatpush3.bf16.msra.mxu0 %v1093_v17  ;;  %v126_v52 = vld [vmem:[%s1925_s1 + $0x300] sm:$0xff]  ;;  %v127_v54 = vld [vmem:[%s1925_s1 + $0x308] sm:$0xff]  ;;  %v113_v56 = vld [vmem:[%s1925_s1 + $0x298] sm:$0xff]  ;;  %v1137_v62 = vpack.c.bf16 %v95_v51, %v94_v50 }
  0x1a   :  { %1096 = vmatprep.subr.bf16.mxu0 %v1095_v21  ;;  %v144_v59 = vld [vmem:[%s1925_s1 + $0x390] sm:$0xff]  ;;  %v145_v60 = vld [vmem:[%s1925_s1 + $0x398] sm:$0xff]  ;;  %v1169_v2 = vpack.c.bf16 %v127_v54, %v126_v52  ;;  %v1139_v3 = vpack.c.bf16 %v113_v56, %v112_v55  ;;  %v114_v9 = vld [vmem:[%s1925_s1 + $0x2a0] sm:$0xff] }
  0x1b   :  { %1126 = vmatpush3.bf16.msra.mxu1 %v1125_v20  ;;  %v96_v4 = vld [vmem:[%s1925_s1 + $0x210] sm:$0xff]  ;;  %v97_v5 = vld [vmem:[%s1925_s1 + $0x218] sm:$0xff]  ;;  %v1171_v0 = vpack.c.bf16 %v145_v60, %v144_v59  ;;  %v115_v10 = vld [vmem:[%s1925_s1 + $0x2a8] sm:$0xff] }
  0x1c   :  { %1128 = vmatprep.subr.bf16.mxu1 %v1127_v25  ;;  %v128_v6 = vld [vmem:[%s1925_s1 + $0x310] sm:$0xff]  ;;  %v129_v7 = vld [vmem:[%s1925_s1 + $0x318] sm:$0xff]  ;;  %v146_v12 = vld [vmem:[%s1925_s1 + $0x3a0] sm:$0xff]  ;;  %v1141_v16 = vpack.c.bf16 %v97_v5, %v96_v4  ;;  %v1143_v19 = vpack.c.bf16 %v115_v10, %v114_v9 }
  0x1d   :  { %1098 = vmatpush3.bf16.msra.mxu0 %v1097_v33  ;;  %v147_v14 = vld [vmem:[%s1925_s1 + $0x3a8] sm:$0xff]  ;;  %v1173_v17 = vpack.c.bf16 %v129_v7, %v128_v6  ;;  %v98_v20 = vld [vmem:[%s1925_s1 + $0x220] sm:$0xff]  ;;  %v116_v26 = vld [vmem:[%s1925_s1 + $0x2b0] sm:$0xff] }
  0x1e   :  { %1100 = vmatprep.subr.bf16.mxu0 %v1099_v35  ;;  %v99_v21 = vld [vmem:[%s1925_s1 + $0x228] sm:$0xff]  ;;  %v130_v22 = vld [vmem:[%s1925_s1 + $0x320] sm:$0xff]  ;;  %v1175_v23 = vpack.c.bf16 %v147_v14, %v146_v12  ;;  %v117_v27 = vld [vmem:[%s1925_s1 + $0x2b8] sm:$0xff] }
  0x1f   :  { %1130 = vmatpush3.bf16.msra.mxu1 %v1129_v34  ;;  %v131_v25 = vld [vmem:[%s1925_s1 + $0x328] sm:$0xff]  ;;  %v148_v28 = vld [vmem:[%s1925_s1 + $0x3b0] sm:$0xff]  ;;  %v149_v29 = vld [vmem:[%s1925_s1 + $0x3b8] sm:$0xff]  ;;  %v1145_v30 = vpack.c.bf16 %v99_v21, %v98_v20  ;;  %v1147_v32 = vpack.c.bf16 %v117_v27, %v116_v26 }
  0x20   :  { %1132 = vmatprep.subr.bf16.mxu1 %v1131_v39  ;;  %v1177_v31 = vpack.c.bf16 %v131_v25, %v130_v22  ;;  %v100_v33 = vld [vmem:[%s1925_s1 + $0x230] sm:$0xff]  ;;  %v101_v34 = vld [vmem:[%s1925_s1 + $0x238] sm:$0xff]  ;;  %v1179_v36 = vpack.c.bf16 %v149_v29, %v148_v28  ;;  %v118_v38 = vld [vmem:[%s1925_s1 + $0x2c0] sm:$0xff]  ;;  %v178_v28 = vsub.s32 4, %v1502_v63 }
  0x21   :  { %1102 = vmatpush3.bf16.msra.mxu0 %v1101_v46  ;;  %v132_v35 = vld [vmem:[%s1925_s1 + $0x330] sm:$0xff]  ;;  %v133_v37 = vld [vmem:[%s1925_s1 + $0x338] sm:$0xff]  ;;  %v119_v39 = vld [vmem:[%s1925_s1 + $0x2c8] sm:$0xff]  ;;  %v1149_v42 = vpack.c.bf16 %v101_v34, %v100_v33  ;;  %v1316_v34 = vmov 0.0|0.0  }
  0x22   :  { %1136 = vmatprep.subr.bf16.mxu0 %v1135_v49  ;;  %v150_v40 = vld [vmem:[%s1925_s1 + $0x3c0] sm:$0xff]  ;;  %v151_v41 = vld [vmem:[%s1925_s1 + $0x3c8] sm:$0xff]  ;;  %v1181_v44 = vpack.c.bf16 %v133_v37, %v132_v35  ;;  %v1151_v45 = vpack.c.bf16 %v119_v39, %v118_v38  ;;  %v120_v51 = vld [vmem:[%s1925_s1 + $0x2d0] sm:$0xff]  ;;  %v1318_v37 = vmov 0.0  }
  0x23   :  { %1134 = vmatpush3.bf16.msra.mxu1 %v1133_v48  ;;  %v102_v46 = vld [vmem:[%s1925_s1 + $0x240] sm:$0xff]  ;;  %v103_v47 = vld [vmem:[%s1925_s1 + $0x248] sm:$0xff]  ;;  %v1183_v49 = vpack.c.bf16 %v151_v41, %v150_v40  ;;  %v121_v52 = vld [vmem:[%s1925_s1 + $0x2d8] sm:$0xff] }
  0x24   :  { %1168 = vmatprep.subr.bf16.mxu1 %v1167_v53  ;;  %265 = vmatmul.mubr.f32.vlgmr.msra.gmra.mrb[0].mxu0 %v163_v58  ;;  %v134_v48 = vld [vmem:[%s1925_s1 + $0x340] sm:$0xff]  ;;  %v135_v50 = vld [vmem:[%s1925_s1 + $0x348] sm:$0xff]  ;;  %v152_v53 = vld [vmem:[%s1925_s1 + $0x3d0] sm:$0xff]  ;;  %v1153_v55 = vpack.c.bf16 %v103_v47, %v102_v46  ;;  %v1155_v57 = vpack.c.bf16 %v121_v52, %v120_v51 }
  0x25   :  { %1138 = vmatpush3.bf16.msra.mxu0 %v1137_v62  ;;  %404 = vmatprep.mubr.f32.mxu0 %v183_v11  ;;  %v153_v54 = vld [vmem:[%s1925_s1 + $0x3d8] sm:$0xff]  ;;  %v1185_v56 = vpack.c.bf16 %v135_v50, %v134_v48  ;;  %v104_v58 = vld [vmem:[%s1925_s1 + $0x250] sm:$0xff]  ;;  %v155_v4 = vld [vmem:[%s1925_s1 + $0x3e8] sm:$0xff] }
  0x26   :  { %335 = vmatmul.mubr.f32.vlgmr.msra.gmra.mrb[0].mxu1 %v171_v1  ;;  %1140 = vmatprep.subr.bf16.mxu0 %v1139_v3  ;;  %v105_v59 = vld [vmem:[%s1925_s1 + $0x258] sm:$0xff]  ;;  %v136_v60 = vld [vmem:[%s1925_s1 + $0x350] sm:$0xff]  ;;  %v1187_v61 = vpack.c.bf16 %v153_v54, %v152_v53  ;;  %v122_v1 = vld [vmem:[%s1925_s1 + $0x2e0] sm:$0xff] }
  0x27   :  { %1170 = vmatpush3.bf16.msra.mxu1 %v1169_v2  ;;  %474 = vmatprep.mubr.f32.mxu1 %v191_v15  ;;  %v137_v62 = vld [vmem:[%s1925_s1 + $0x358] sm:$0xff]  ;;  %v123_v2 = vld [vmem:[%s1925_s1 + $0x2e8] sm:$0xff]  ;;  %v154_v3 = vld [vmem:[%s1925_s1 + $0x3e0] sm:$0xff]  ;;  %v1157_v5 = vpack.c.bf16 %v105_v59, %v104_v58 }
  0x28   :  { %1172 = vmatprep.subr.bf16.mxu1 %v1171_v0  ;;  %v1189_v6 = vpack.c.bf16 %v137_v62, %v136_v60  ;;  %v1159_v0 = vpack.c.bf16 %v123_v2, %v122_v1  ;;  %v106_v7 = vld [vmem:[%s1925_s1 + $0x260] sm:$0xff]  ;;  %v107_v9 = vld [vmem:[%s1925_s1 + $0x268] sm:$0xff]  ;;  %v1191_v11 = vpack.c.bf16 %v155_v4, %v154_v3  ;;  %v124_v14 = vld [vmem:[%s1925_s1 + $0x2f0] sm:$0xff] }
  0x29   :  { %1142 = vmatpush3.bf16.msra.mxu0 %v1141_v16  ;;  %v138_v10 = vld [vmem:[%s1925_s1 + $0x360] sm:$0xff]  ;;  %v139_v12 = vld [vmem:[%s1925_s1 + $0x368] sm:$0xff]  ;;  %v125_v15 = vld [vmem:[%s1925_s1 + $0x2f8] sm:$0xff] }
  0x2a   :  { %1144 = vmatprep.subr.bf16.mxu0 %v1143_v19  ;;  %v156_v16 = vld [vmem:[%s1925_s1 + $0x3f0] sm:$0xff]  ;;  %v1161_v19 = vpack.c.bf16 %v107_v9, %v106_v7  ;;  %v1193_v20 = vpack.c.bf16 %v139_v12, %v138_v10  ;;  %v1163_v21 = vpack.c.bf16 %v125_v15, %v124_v14  ;;  %v141_v27 = vld [vmem:[%s1925_s1 + $0x378] sm:$0xff]  ;;  %v481_v35 = vld [vmem:[%s1929_s3] sm:$0xff] }
  0x2b   :  { %1174 = vmatpush3.bf16.msra.mxu1 %v1173_v17  ;;  %v157_v17 = vld [vmem:[%s1925_s1 + $0x3f8] sm:$0xff]  ;;  %v108_v22 = vld [vmem:[%s1925_s1 + $0x270] sm:$0xff]  ;;  %v483_v58 = vld [vmem:[%s1932_s4] sm:$0x1] }
  0x2c   :  { %1176 = vmatprep.subr.bf16.mxu1 %v1175_v23  ;;  %v109_v23 = vld [vmem:[%s1925_s1 + $0x278] sm:$0xff]  ;;  %v1195_v25 = vpack.c.bf16 %v157_v17, %v156_v16  ;;  %v140_v26 = vld [vmem:[%s1925_s1 + $0x370] sm:$0xff]  ;;  %v558_v60 = vld [vmem:[%s1933_s5] sm:$0xff] }
  0x2d   :  { %1146 = vmatpush3.bf16.msra.mxu0 %v1145_v30  ;;  %v1165_v29 = vpack.c.bf16 %v109_v23, %v108_v22  ;;  %v186_v30 = vsub.s32 6, %v1502_v63  ;;  %v559_v62 = vld [vmem:[%s1933_s5 + $0x8] sm:$0xff]  ;;  %v560_v1 = vld [vmem:[%s1933_s5 + $0x10] sm:$0xff]  ;;  %v561_v2 = vld [vmem:[%s1933_s5 + $0x18] sm:$0xff] }
  0x2e   :  { %1148 = vmatprep.subr.bf16.mxu0 %v1147_v32  ;;  %v179_v32 = vrot.slane %v1548_v24, %v178_v28  ;;  %v562_v4 = vld [vmem:[%s1933_s5 + $0x20] sm:$0xff]  ;;  %v567_v9 = vld [vmem:[%s1933_s5 + $0x48] sm:$0xff]  ;;  %v569_v12 = vld [vmem:[%s1933_s5 + $0x58] sm:$0xff] }
  0x2f   :  { %1178 = vmatpush3.bf16.msra.mxu1 %v1177_v31  ;;  %v1197_v31 = vpack.c.bf16 %v141_v27, %v140_v26  ;;  %v187_v33 = vrot.slane %v1548_v24, %v186_v30  ;;  %v158_v24 = vld [vmem:[%s1930_s2] sm:$0x1]  ;;  %v571_v15 = vld [vmem:[%s1933_s5 + $0x68] sm:$0xff]  ;;  %v572_v16 = vld [vmem:[%s1933_s5 + $0x70] sm:$0xff] }
  0x30   :  { %1180 = vmatprep.subr.bf16.mxu1 %v1179_v36  ;;  %v482_v36 = vld [vmem:[%s1929_s3 + $0x8] sm:$0xff]  ;;  %v566_v7 = vld [vmem:[%s1933_s5 + $0x40] sm:$0xff]  ;;  %v573_v17 = vld [vmem:[%s1933_s5 + $0x78] sm:$0xff] }
  0x31   :  { %1150 = vmatpush3.bf16.msra.mxu0 %v1149_v42  ;;  %v1200_v38 = vpack.c.bf16 %v482_v36, %v481_v35  ;;  %v570_v14 = vld [vmem:[%s1933_s5 + $0x60] sm:$0xff] }
  0x32   :  { %1152 = vmatprep.subr.bf16.mxu0 %v1151_v45 }
  0x33   :  { %1182 = vmatpush3.bf16.msra.mxu1 %v1181_v44 }
  0x34   :  { %1184 = vmatprep.subr.bf16.mxu1 %v1183_v49 }
  0x35   :  { %1154 = vmatpush3.bf16.msra.mxu0 %v1153_v55 }
  0x36   :  { %1156 = vmatprep.subr.bf16.mxu0 %v1155_v57  ;;  %v614_v57 = vld [vmem:[%s1931_s7] sm:$0x1]  }
  0x37   :  { %1186 = vmatpush3.bf16.msra.mxu1 %v1185_v56 }
  0x38   :  { %1188 = vmatprep.subr.bf16.mxu1 %v1187_v61 }
  0x39   :  { %1158 = vmatpush3.bf16.msra.mxu0 %v1157_v5  ;;  %v563_v5 = vld [vmem:[%s1933_s5 + $0x28] sm:$0xff] }
  0x3a   :  { %1160 = vmatprep.subr.bf16.mxu0 %v1159_v0  ;;  %v565_v0 = vld [vmem:[%s1933_s5 + $0x38] sm:$0xff] }
  0x3b   :  { %1190 = vmatpush3.bf16.msra.mxu1 %v1189_v6  ;;  %v564_v6 = vld [vmem:[%s1933_s5 + $0x30] sm:$0xff] }
  0x3c   :  { %1192 = vmatprep.subr.bf16.mxu1 %v1191_v11  ;;  %v568_v11 = vld [vmem:[%s1933_s5 + $0x50] sm:$0xff]  ;;  %s1858_s5 = smov 0  }
  0x3d   :  { %1162 = vmatpush3.bf16.msra.mxu0 %v1161_v19 }
  0x3e   :  { %1164 = vmatprep.subr.bf16.mxu0 %v1163_v21 }
  0x3f   :  { %1194 = vmatpush3.bf16.msra.mxu1 %v1193_v20 }
  0x40   :  { %1196 = vmatprep.subr.bf16.mxu1 %v1195_v25 }
  0x41   :  { %1166 = vmatpush3.bf16.msra.mxu0 %v1165_v29 }
  0x42   :  { %1199 = vmatprep.subr.bf16.mxu0 %v1316_v34 }
  0x43   :  { %1198 = vmatpush3.bf16.msra.mxu1 %v1197_v31 }
  0x44   :  { %405 = vmatmul.mubr.f32.vlgmr.msra.gmra.mrb[2].mxu0 %v179_v32 }
  0x45   :  { %1033 = vmatprep.mubr.msk.f32.mxu0 %vm1317_vm0, %v1318_v37  ;;  %1201 = vmatpush3.bf16.msra.mxu0 %v1200_v38  ;;  %v1852_v37 = vmov 0.0  }
  0x46   :  { %475 = vmatmul.mubr.f32.vlgmr.msra.gmra.mrb[2].mxu1 %v187_v33 }
  0xf7   :  { %v901_v39 = vpop.f32.mrb[0].mxu0 }
  0xf8   :  { %v902_v40 = vpop.f32.mrb[1].mxu0 }
  0xf9   :  { %v936_v41 = vpop.f32.mrb[0].mxu1  ;;  %v903_v42 = vadd.f32 %v902_v40, %v901_v39 }
  0xfa   :  { %v937_v44 = vpop.f32.mrb[1].mxu1 }
  0xfb   :  { %v938_v45 = vadd.f32 %v937_v44, %v936_v41  ;;  %v267_v46 = vadd.f32 %v903_v42, %v158_v24 }
  0xfd   :  { %v337_v47 = vadd.f32 %v938_v45, %v267_v46 }
 0x117   :  { %v971_v48 = vpop.f32.mrb[2].mxu0 }
 0x118   :  { %v972_v49 = vpop.f32.mrb[3].mxu0 }
 0x119   :  { %v1006_v50 = vpop.f32.mrb[2].mxu1  ;;  %v973_v51 = vadd.f32 %v972_v49, %v971_v48 }
 0x11a   :  { %v1007_v52 = vpop.f32.mrb[3].mxu1 }
 0x11b   :  { %v1008_v53 = vadd.f32 %v1007_v52, %v1006_v50  ;;  %v407_v54 = vadd.f32 %v973_v51, %v337_v47 }
 0x11d   :  { %v477_v55 = vadd.f32 %v1008_v53, %v407_v54 }
 0x11f   :  { %1276 = vtanh.f32 %v477_v55 }
 0x129   :  { %v1277_v56 = vpop.eup %1276 }
 0x12a   :  { %1034 = vmatmul.mubr.msk.f32.vlgmr.msra.gmra.mrb[4].mxu0 %vm484_vm1, %v1277_v56 }
 0x1fd   :  { %v554_v59 = vpop.f32.mrb[4].mxu0 }
 0x1fe   :  { %v555_v61 = vadd.f32 %v554_v59, %v483_v58  ;;  %v1035_v3 = vpop.f32.mrb[5].mxu0 }
 0x200   :  { %v577_v10 = vrot.slane %v555_v61, %v1588_v43 }
 0x202   :  { %v578_v19 = vadd.f32 %v577_v10, %v558_v60  ;;  %v579_v20 = vadd.f32 %v577_v10, %v559_v62  ;;  %v580_v21 = vadd.f32 %v577_v10, %v560_v1  ;;  %v581_v22 = vadd.f32 %v577_v10, %v561_v2 }
 0x203   :  { %v582_v23 = vadd.f32 %v577_v10, %v562_v4  ;;  %v583_v25 = vadd.f32 %v577_v10, %v563_v5  ;;  %v584_v26 = vadd.f32 %v577_v10, %v564_v6  ;;  %v585_v27 = vadd.f32 %v577_v10, %v565_v0 }
 0x204   :  { %v586_v28 = vadd.f32 %v577_v10, %v566_v7  ;;  %v587_v29 = vadd.f32 %v577_v10, %v567_v9  ;;  %v588_v30 = vadd.f32 %v577_v10, %v568_v11  ;;  %v589_v31 = vadd.f32 %v577_v10, %v569_v12  ;;  %594 = vst [vmem:[#allocation2] sm:$0xff] %v578_v19 }
 0x205   :  { %595 = vst [vmem:[#allocation2 + $0x8] sm:$0xff] %v579_v20  ;;  %596 = vst [vmem:[#allocation2 + $0x10] sm:$0xff] %v580_v21  ;;  %v590_v32 = vadd.f32 %v577_v10, %v570_v14  ;;  %v591_v33 = vadd.f32 %v577_v10, %v571_v15  ;;  %v592_v34 = vadd.f32 %v577_v10, %v572_v16 }
 0x206   :  { %597 = vst [vmem:[#allocation2 + $0x18] sm:$0xff] %v581_v22  ;;  %v593_v35 = vadd.f32 %v577_v10, %v573_v17  ;;  %598 = vst [vmem:[#allocation2 + $0x20] sm:$0xff] %v582_v23 }
 0x207   :  { %599 = vst [vmem:[#allocation2 + $0x28] sm:$0xff] %v583_v25  ;;  %600 = vst [vmem:[#allocation2 + $0x30] sm:$0xff] %v584_v26 }
 0x208   :  { %601 = vst [vmem:[#allocation2 + $0x38] sm:$0xff] %v585_v27  ;;  %602 = vst [vmem:[#allocation2 + $0x40] sm:$0xff] %v586_v28 }
 0x209   :  { %603 = vst [vmem:[#allocation2 + $0x48] sm:$0xff] %v587_v29  ;;  %604 = vst [vmem:[#allocation2 + $0x50] sm:$0xff] %v588_v30 }
 0x20a   :  { %605 = vst [vmem:[#allocation2 + $0x58] sm:$0xff] %v589_v31  ;;  %606 = vst [vmem:[#allocation2 + $0x60] sm:$0xff] %v590_v32 }
 0x20b   :  { %607 = vst [vmem:[#allocation2 + $0x68] sm:$0xff] %v591_v33  ;;  %608 = vst [vmem:[#allocation2 + $0x70] sm:$0xff] %v592_v34  ;;  %v613_v36 = vld [vmem:[#allocation2] sm:$0x1]  }
 0x20c   :  { %609 = vst [vmem:[#allocation2 + $0x78] sm:$0xff] %v593_v35 }
 0x20d LB: > { %s1319_s26 = smov 96   ;;  %v624_v38 = vadd.f32 %v1306_v57, %v1310_v36  ;;  %s1320_s27 = smov 32   ;;  %v651_v45 = vld [vmem:[%s1926_s6 + $0x8] sm:$0xff]  ;;  %v653_v46 = vld [vmem:[%s1926_s6 + $0x18] sm:$0xff]  ;;  %v650_v47 = vld [vmem:[%s1926_s6] sm:$0xff]  ;;  %v1321_v59 = vmov 0.0   ;;  %s1314_s5 = sphi %s1858_s5, %s620_s5   ;;  %v1310_v36 = vphi %v613_v36, %v841_v36   ;;  %v1306_v57 = vphi %v614_v57, %v1900_v57   ;;  %v1302_v37 = vphi %v1852_v37, %v1891_v37  }
 0x20e   : > { %632 = vrot.lane.b32.xlu0 %v1306_v57, %s1319_s26  ;;  %v1202_v48 = vpack.c.bf16 %v653_v46, %v651_v45  ;;  %v652_v49 = vld [vmem:[%s1926_s6 + $0x10] sm:$0xff]  ;;  %v655_v51 = vld [vmem:[%s1926_s6 + $0x28] sm:$0xff]  ;;  %v657_v52 = vld [vmem:[%s1926_s6 + $0x38] sm:$0xff]  ;;  %738 = vmatprep.mubr.f32.mxu0 %v1321_v59  ;;  %s1322_s2 = smov 64   ;;  %vm670_vm2 = vcmask 261120   ;;  %vm745_vm3 = vcmask 1040384   ;;  %s757_s22 = scalar_lea.vmem %s1927_s8, %s1314_s5 }
 0x20f   : > { %v865_v39 = vmul.f32 -1.442695, %v624_v38  ;;  %v1204_v50 = vpack.c.bf16 %v652_v49, %v650_v47  ;;  %v1206_v53 = vpack.c.bf16 %v657_v52, %v655_v51  ;;  %v654_v54 = vld [vmem:[%s1926_s6 + $0x20] sm:$0xff]  ;;  %v656_v55 = vld [vmem:[%s1926_s6 + $0x30] sm:$0xff]  ;;  %v760_v11 = vld [vmem:[#allocation2 + $0x8] sm:$0xff]  ;;  %v1323_v14 = vmov 0.0|0.0  }
 0x210   : > { %1203 = vmatprep.subr.bf16.mxu0 %v1202_v48  ;;  %v1208_v57 = vpack.c.bf16 %v656_v55, %v654_v54  ;;  %v658_v3 = vld [vmem:[%s1931_s7] sm:$0x3]  ;;  %v761_v12 = vld [vmem:[#allocation2 + $0x10] sm:$0xff]  ;;  %1210 = vmatprep.subr.bf16.mxu1 %v1323_v14  ;;  %v762_v16 = vld [vmem:[#allocation2 + $0x18] sm:$0xff]  ;;  %vm1324_vm5 = vmmov 0   ;;  %s620_s5 = sadd.s32 1, %s1314_s5  }
 0x211   : > { %1278 = vpow2.f32 %v865_v39  ;;  %1205 = vmatpush1.bf16.msra.mxu0 %v1204_v50  ;;  %v663_v4 = vrot.slane %v658_v3, %v1588_v43  ;;  %v667_v5 = vrot.slane %v658_v3, %v166_v13  ;;  %v759_v10 = vld [vmem:[#allocation2] sm:$0xff]  ;;  %v1214_v17 = vpack.c.bf16 %v762_v16, %v761_v12  ;;  %v764_v20 = vld [vmem:[#allocation2 + $0x28] sm:$0xff]  ;;  %v765_v22 = vld [vmem:[#allocation2 + $0x30] sm:$0xff]  ;;  %1068 = vmatprep.mubr.msk.f32.mxu1 %vm1324_vm5, %v1321_v59  ;;  %p617_p0 = scmp.ge.s32.totalorder %s620_s5, 629  }
 0x212   : > { %1207 = vmatprep.subr.bf16.mxu0 %v1206_v53  ;;  %v1211_v15 = vpack.c.bf16 %v760_v11, %v759_v10  ;;  %v763_v19 = vld [vmem:[#allocation2 + $0x20] sm:$0xff]  ;;  %v766_v23 = vld [vmem:[#allocation2 + $0x38] sm:$0xff]  ;;  %v768_v27 = vld [vmem:[#allocation2 + $0x48] sm:$0xff] }
 0x213   : > { %v1217_v21 = vpack.c.bf16 %v764_v20, %v763_v19  ;;  %v1220_v25 = vpack.c.bf16 %v766_v23, %v765_v22  ;;  %v767_v26 = vld [vmem:[#allocation2 + $0x40] sm:$0xff]  ;;  %v769_v29 = vld [vmem:[#allocation2 + $0x50] sm:$0xff]  ;;  %v770_v30 = vld [vmem:[#allocation2 + $0x58] sm:$0xff] }
 0x214   : > { %1212 = vmatpush3.bf16.msra.mxu1 %v1211_v15  ;;  %v1223_v28 = vpack.c.bf16 %v768_v27, %v767_v26  ;;  %v1226_v31 = vpack.c.bf16 %v770_v30, %v769_v29  ;;  %v771_v32 = vld [vmem:[#allocation2 + $0x60] sm:$0xff]  ;;  %v772_v33 = vld [vmem:[#allocation2 + $0x68] sm:$0xff]  ;;  %v773_v35 = vld [vmem:[#allocation2 + $0x70] sm:$0xff] }
 0x215   : > { %1209 = vmatpush1.bf16.msra.mxu0 %v1208_v57  ;;  %1213 = vmatprep.subr.bf16.mxu1 %v1323_v14  ;;  %v1229_v34 = vpack.c.bf16 %v772_v33, %v771_v32 }
 0x218   : > { %1215 = vmatpush3.bf16.msra.mxu1 %v1214_v17 }
 0x219   : > { %1216 = vmatprep.subr.bf16.mxu1 %v1323_v14 }
 0x21b   : > { %v1279_v24 = vpop.eup %1278 }
 0x21c   : > { %v628_v40 = vadd.f32 1.0, %v1279_v24  ;;  %1218 = vmatpush3.bf16.msra.mxu1 %v1217_v21 }
 0x21d   : > { %1219 = vmatprep.subr.bf16.mxu1 %v1323_v14 }
 0x21e   : > { %1280 = vrcp.f32 %v628_v40 }
 0x220   : > { %1221 = vmatpush3.bf16.msra.mxu1 %v1220_v25 }
 0x221   : > { %1222 = vmatprep.subr.bf16.mxu1 %v1323_v14 }
 0x224   : > { %1224 = vmatpush3.bf16.msra.mxu1 %v1223_v28 }
 0x225   : > { %1225 = vmatprep.subr.bf16.mxu1 %v1323_v14 }
 0x228   : > { %v1281_v41 = vpop.eup %1280  ;;  %1227 = vmatpush3.bf16.msra.mxu1 %v1226_v31 }
 0x229   : > { %v642_v61 = vsub.f32 1.0, %v1281_v41  ;;  %v648_v62 = vmul.f32 %v1302_v37, %v1281_v41  ;;  %1228 = vmatprep.subr.bf16.mxu1 %v1323_v14 }
 0x22c   : > { %1230 = vmatpush3.bf16.msra.mxu1 %v1229_v34 }
 0x22d   : > { %1231 = vmatprep.subr.bf16.mxu1 %v1323_v14 }
 0x280   : > { %v633_v42 = vpop.permute.xlu0 %632 }
 0x281   : > { %v635_v44 = vmul.f32 %v1281_v41, %v633_v42 }
 0x283   : > { %637 = vrot.lane.b32.xlu0 %v635_v44, %s1320_s27  ;;  %v1325_v44 = vmov 1.0  }
 0x2f5   : > { %v638_v56 = vpop.permute.xlu0 %637 }
 0x2f6   : > { %v640_v58 = vadd.f32 %v1310_v36, %v638_v56  ;;  %v774_v36 = vld [vmem:[#allocation2 + $0x78] sm:$0xff] }
 0x2f7   : > { %v1232_v38 = vpack.c.bf16 %v774_v36, %v773_v35 }
 0x2f8   : > { %1282 = vtanh.f32 %v640_v58 }
 0x2f9   : > { %1233 = vmatpush3.bf16.msra.mxu1 %v1232_v38 }
 0x302   : > { %v1283_v60 = vpop.eup %1282 }
 0x303   : > { %644 = vrot.lane.b32.xlu1 %v1283_v60, %s1322_s2 }
 0x375   : > { %v645_v1 = vpop.permute.xlu1 %644 }
 0x376   : > { %v647_v2 = vmul.f32 %v645_v1, %v642_v61 }
 0x378   : > { %v1891_v37 = vadd.f32 %v648_v62, %v647_v2  }
 0x37a   : > { %866 = vmatmul.mubr.msk.f32.vlgmr.msra.gmra.mrb[0].mxu0 %vm670_vm2, %v1891_v37 }
 0x44d   : > { %v740_v6 = vpop.f32.mrb[0].mxu0 }
 0x44e   : > { %v1900_v57 = vadd.f32 %v740_v6, %v663_v4   ;;  %v742_v0 = vpop.f32.mrb[1].mxu0 }
 0x44f   : > { %v743_v7 = vadd.f32 %v742_v0, %v667_v5 }
 0x451   : > { %v746_v9 = vsel %vm745_vm3, %v743_v7, -inf }
 0x452   : > { %747 = vmax.xlane.f32.xlu1 %v746_v9 }
 0x4df   : > { %v748_v39 = vpop.xlane.xlu1 %747 }
 0x4e0   : > { %vm749_vm4 = vcmp.eq.f32.partialorder %v743_v7, %v748_v39 }
 0x4e1   : > { %v750_v24 = vsel %vm749_vm4, %v612_v18, 128.0 }
 0x4e2   : > { %v751_v40 = vsel %vm745_vm3, %v750_v24, inf }
 0x4e3   : > { %752 = vmin.xlane.f32.xlu0 %v751_v40 }
 0x570   : > { %v753_v41 = vpop.xlane.xlu0 %752 }
 0x571   : > { %vm754_vm6 = vcmp.eq.f32.partialorder %v612_v18, %v753_v41 }
 0x572   : > { %v867_v42 = vsel %vm754_vm6, 1.0, %v1321_v59  ;;  %1069 = vmatmul.mubr.msk.f32.vlgmr.msra.gmra.mrb[0].mxu1 %vm754_vm6, %v1325_v44 }
 0x573   : > { %758 = vst [vmem:[%s757_s22] sm:$0x1] %v867_v42 }
 0x640   :  { %619 = sbr.rel (!%p617_p0) target bundleno = 525 (0x20d), region = 60 }
 0x645   : > { %v841_v36 = vpop.f32.mrb[0].mxu1  }
 0x646   : > { %v1070_v45 = vpop.f32.mrb[1].mxu1 }

</bundles_post_ra>
